<compile_context>
chip_gen: v7x
topology: tpu7x:2x2x1
jax: 0.10.0
libtpu: 0.0.40
codegen_flags: <defaults>
</compile_context>

<pallas_src>
import functools

import jax
import jax.numpy as jnp
from jax.experimental import pallas as pl
from jax.experimental.pallas import tpu as pltpu


_LANE = 128          # vreg lane width
_MAX_TILE_R = 2048   # rows of 128 lanes per pipelined block (f32: 1 MiB/stream)


def _num_tensorcores_per_chip():
    """v7x has 2 TensorCores per chip; v5e/v6e have 1."""
    try:
        dev = jax.devices()[0]
        if dev.platform != "tpu":
            return 1
        kind = str(getattr(dev, "device_kind", "")).lower()
        return 2 if "v7" in kind else 1
    except Exception:
        return 1


def _bce_with_logits(x, t):
    # numerically stable BCE with logits, f32 math
    return jnp.maximum(x, 0.0) - x * t + jnp.log1p(jnp.exp(-jnp.abs(x)))


def _ds_loss_kernel(*refs, combo_weights, inv_n, n_elems, tiles_per_slice,
                    has_wm, needs_mask):
    """Fused deep-supervision weighted-BCE loss, tiled over rows.

    refs = (tgt_ref, [wm_ref], out_ref_0..out_ref_{K-1}, loss_ref, acc_ref)
      tgt_ref / wm_ref / out_ref_i : (TILE_R, 128) VMEM blocks (native dtype)
      loss_ref                     : (1, 1) SMEM  -- per-slice partial loss
      acc_ref                      : (TILE_R, 128) f32 VMEM scratch accumulator
    Grid = (num_slices, tiles_per_slice); axis 1 is the reduction axis.
    """
    n_out = len(combo_weights)
    idx = 0
    tgt_ref = refs[idx]; idx += 1
    wm_ref = None
    if has_wm:
        wm_ref = refs[idx]; idx += 1
    out_refs = refs[idx:idx + n_out]; idx += n_out
    loss_ref = refs[idx]; idx += 1
    acc_ref = refs[idx]

    c = pl.program_id(0)
    i = pl.program_id(1)

    @pl.when(i == 0)
    def _init():
        acc_ref[...] = jnp.zeros_like(acc_ref)

    tgt = tgt_ref[...].astype(jnp.float32)

    # Head 0 (the main output, weight 1.0 in practice): no scale multiply.
    x0 = out_refs[0][...].astype(jnp.float32)
    b0 = _bce_with_logits(x0, tgt)
    weighted = b0 if combo_weights[0] == 1.0 else jnp.float32(combo_weights[0]) * b0
    for cw, o_ref in zip(combo_weights[1:], out_refs[1:]):
        x = o_ref[...].astype(jnp.float32)
        b = _bce_with_logits(x, tgt)
        weighted = weighted + (b if cw == 1.0 else jnp.float32(cw) * b)

    if has_wm:
        weighted = weighted * wm_ref[...].astype(jnp.float32)

    if needs_mask:
        tile_r, lanes = acc_ref.shape
        row_base = (c * tiles_per_slice + i) * tile_r
        is_ragged = (row_base + tile_r) * lanes > n_elems

        @pl.when(jnp.logical_not(is_ragged))
        def _accumulate_fast():
            acc_ref[...] += weighted

        @pl.when(is_ragged)
        def _accumulate_masked():
            rix = jax.lax.broadcasted_iota(jnp.int32, (tile_r, lanes), 0) + row_base
            lix = jax.lax.broadcasted_iota(jnp.int32, (tile_r, lanes), 1)
            eix = rix * lanes + lix
            acc_ref[...] += jnp.where(eix < n_elems, weighted, 0.0)
    else:
        acc_ref[...] += weighted

    @pl.when(i == pl.num_programs(1) - 1)
    def _finalize():
        loss_ref[0, 0] = jnp.sum(acc_ref[...]) * jnp.float32(inv_n)


class DeepSupervisionLoss:
    """JAX/Pallas port of the PyTorch DeepSupervisionLoss module.

    main_loss is fixed to weighted BCE-with-logits (see header comment);
    aux_weights mirrors the PyTorch default [0.4, 0.3, 0.2].
    """

    def __init__(self, aux_weights=(0.4, 0.3, 0.2)):
        self.aux_weights = tuple(float(w) for w in aux_weights)
        self._tc_per_chip = _num_tensorcores_per_chip()

    def _run_kernel(self, outputs_list, target, weight_map, combo_weights):
        has_wm = weight_map is not None
        n_elems = int(target.size)
        rows = pl.cdiv(n_elems, _LANE)
        pad_elems = rows * _LANE - n_elems

        # ---- tiling ------------------------------------------------------
        if rows <= _MAX_TILE_R:
            num_slices = 1
            tile_r = rows                      # block == full array dim
            tiles_per_slice = 1
        else:
            num_slices = 2 if (self._tc_per_chip >= 2
                               and rows >= 2 * _MAX_TILE_R) else 1
            tile_r = _MAX_TILE_R               # multiple of 16 (f32 & bf16 ok)
            tiles_per_slice = pl.cdiv(rows, num_slices * tile_r)

        covered_elems = num_slices * tiles_per_slice * tile_r * _LANE
        needs_mask = covered_elems > n_elems   # ragged tail / uneven coverage

        # ---- slab views (free reshape when already 128-aligned) ----------
        def to_slab(x):
            if pad_elems == 0:
                return x.reshape(rows, _LANE)
            flat = x.reshape(-1)
            flat = jnp.pad(flat, (0, pad_elems))   # <=127 elems; tail masked in-kernel
            return flat.reshape(rows, _LANE)

        inputs = [to_slab(target)]
        if has_wm:
            inputs.append(to_slab(weight_map))
        inputs.extend(to_slab(o) for o in outputs_list)

        k = len(outputs_list)
        kernel = functools.partial(
            _ds_loss_kernel,
            combo_weights=tuple(combo_weights),
            inv_n=1.0 / float(n_elems),
            n_elems=n_elems,
            tiles_per_slice=tiles_per_slice,
            has_wm=has_wm,
            needs_mask=bool(needs_mask),
        )

        data_spec = pl.BlockSpec(
            (tile_r, _LANE), lambda c, i: (c * tiles_per_slice + i, 0))

        # ---- VMEM budget (double-buffered inputs + f32 accumulator) ------
        tile_elems = tile_r * _LANE
        stream_bytes = sum(x.dtype.itemsize for x in inputs)
        vmem_needed = 2 * tile_elems * stream_bytes + tile_elems * 4
        vmem_limit = int(min(max(vmem_needed * 5 // 4 + (2 << 20), 8 << 20),
                             48 << 20))

        bytes_accessed = rows * _LANE * stream_bytes + num_slices * 4
        cost = pl.CostEstimate(
            flops=6 * k * n_elems,
            transcendentals=2 * k * n_elems,
            bytes_accessed=bytes_accessed,
        )

        partials = pl.pallas_call(
            kernel,
            out_shape=jax.ShapeDtypeStruct((num_slices, 1), jnp.float32),
            grid_spec=pltpu.PrefetchScalarGridSpec(
                num_scalar_prefetch=0,
                grid=(num_slices, tiles_per_slice),
                in_specs=[data_spec] * len(inputs),
                out_specs=pl.BlockSpec(
                    (1, 1), lambda c, i: (c, 0), memory_space=pltpu.SMEM),
                scratch_shapes=[pltpu.VMEM((tile_r, _LANE), jnp.float32)],
            ),
            compiler_params=pltpu.CompilerParams(
                dimension_semantics=("parallel", "arbitrary"),
                vmem_limit_bytes=vmem_limit,
            ),
            cost_estimate=cost,
        )(*inputs)

        # Per-slice partial sums already include 1/N; just add them.
        return jnp.sum(partials)

    def __call__(self, outputs, target, weight_map=None):
        if not isinstance(outputs, tuple):
            # single-output path: just the main loss (combination weight 1.0)
            return self._run_kernel([outputs], target, weight_map, (1.0,))

        main_output = outputs[0]
        aux_outputs = outputs[1:]
        assert len(aux_outputs) == len(self.aux_weights), (
            f"number of aux outputs ({len(aux_outputs)}) must match "
            f"number of weights ({len(self.aux_weights)})"
        )

        combo_weights = (1.0,) + self.aux_weights  # main weight is 1.0
        return self._run_kernel(
            [main_output, *aux_outputs], target, weight_map, combo_weights)


def _reference_loss(outputs, target, weight_map, aux_weights):
    """Plain-JAX reference matching the PyTorch forward semantics."""
    def bce(x, t, w):
        x = x.astype(jnp.float32)
        t = t.astype(jnp.float32)
        e = jnp.maximum(x, 0.0) - x * t + jnp.log1p(jnp.exp(-jnp.abs(x)))
        if w is not None:
            e = e * w.astype(jnp.float32)
        return jnp.mean(e)

    main = bce(outputs[0], target, weight_map)
    total_aux = 0.0
    for aux, w in zip(outputs[1:], aux_weights):
        total_aux = total_aux + w * bce(aux, target, weight_map)
    return main + total_aux


if __name__ == "__main__":
    key = jax.random.PRNGKey(0)
    B, C, H, W = 2, 1, 16, 16  # NCHW segmentation logits (1 channel)

    k_main, k_a1, k_a2, k_a3, k_tgt, k_wm = jax.random.split(key, 6)
    main_out = jax.random.normal(k_main, (B, C, H, W), dtype=jnp.float32)
    aux1 = jax.random.normal(k_a1, (B, C, H, W), dtype=jnp.float32)
    aux2 = jax.random.normal(k_a2, (B, C, H, W), dtype=jnp.float32)
    aux3 = jax.random.normal(k_a3, (B, C, H, W), dtype=jnp.float32)
    target = (jax.random.uniform(k_tgt, (B, C, H, W)) > 0.5).astype(jnp.float32)
    weight_map = 1.0 + jax.random.uniform(k_wm, (B, C, H, W), dtype=jnp.float32)

    loss_fn = DeepSupervisionLoss(aux_weights=[0.4, 0.3, 0.2])
    outputs = (main_out, aux1, aux2, aux3)

    # 1) full path with weight map
    loss = jax.block_until_ready(loss_fn(outputs, target, weight_map))
    ref = _reference_loss(outputs, target, weight_map, loss_fn.aux_weights)
    assert jnp.allclose(loss, ref, rtol=1e-5, atol=1e-5), (loss, ref)

    # 2) weight_map=None fast path (no wm stream)
    loss_nw = jax.block_until_ready(loss_fn(outputs, target))
    ref_nw = _reference_loss(outputs, target, None, loss_fn.aux_weights)
    assert jnp.allclose(loss_nw, ref_nw, rtol=1e-5, atol=1e-5), (loss_nw, ref_nw)

    # 3) single-output (non-tuple) path
    loss_single = jax.block_until_ready(loss_fn(main_out, target, weight_map))
    ref_single = _reference_loss((main_out,), target, weight_map, ())
    assert jnp.allclose(loss_single, ref_single, rtol=1e-5, atol=1e-5), (
        loss_single, ref_single)

    # 4) ragged shape (n_elems not a multiple of 128) -> exercises the
    #    in-kernel tail mask instead of zero-weight padding
    Hr, Wr = 15, 15
    kr = jax.random.split(jax.random.PRNGKey(1), 5)
    outs_r = tuple(jax.random.normal(kr[j], (B, C, Hr, Wr), dtype=jnp.float32)
                   for j in range(4))
    tgt_r = (jax.random.uniform(kr[4], (B, C, Hr, Wr)) > 0.5).astype(jnp.float32)
    loss_r = jax.block_until_ready(loss_fn(outs_r, tgt_r))
    ref_r = _reference_loss(outs_r, tgt_r, None, loss_fn.aux_weights)
    assert jnp.allclose(loss_r, ref_r, rtol=1e-5, atol=1e-5), (loss_r, ref_r)

    print("KERNEL_OK")
</pallas_src>

<mosaic_0001>
module attributes {stable_mosaic.version = 11 : i64} {
  func.func @_ds_loss_kernel(%arg0: i32, %arg1: i32, %arg2: memref<4x128xf32, #tpu.memory_space<vmem>>, %arg3: memref<4x128xf32, #tpu.memory_space<vmem>>, %arg4: memref<4x128xf32, #tpu.memory_space<vmem>>, %arg5: memref<4x128xf32, #tpu.memory_space<vmem>>, %arg6: memref<4x128xf32, #tpu.memory_space<vmem>>, %arg7: memref<4x128xf32, #tpu.memory_space<vmem>>, %arg8: memref<1x1xf32, #tpu.memory_space<smem>>, %arg9: memref<4x128xf32, #tpu.memory_space<vmem>>) attributes {dimension_semantics = [#tpu.dimension_semantics<parallel>, #tpu.dimension_semantics<arbitrary>], iteration_bounds = array<i64: 1, 1>, scalar_prefetch = 0 : i64, scratch_operands = 1 : i64, tpu.core_type = #tpu.core_type<tc>, window_params = [{transform_indices = @transform_0, window_bounds = array<i64: 4, 128>}, {transform_indices = @transform_1, window_bounds = array<i64: 4, 128>}, {transform_indices = @transform_2, window_bounds = array<i64: 4, 128>}, {transform_indices = @transform_3, window_bounds = array<i64: 4, 128>}, {transform_indices = @transform_4, window_bounds = array<i64: 4, 128>}, {transform_indices = @transform_5, window_bounds = array<i64: 4, 128>}, {transform_indices = @transform_6, window_bounds = array<i64: 1, 1>}]} {
    %c0_i32 = arith.constant 0 : i32
    %0 = arith.cmpi eq, %arg1, %c0_i32 : i32
    %1 = arith.extui %0 : i1 to i32
    %c0_i32_0 = arith.constant 0 : i32
    %2 = arith.cmpi ne, %1, %c0_i32_0 : i32
    scf.if %2 {
      %cst_28 = arith.constant 0.000000e+00 : f32
      %65 = vector.broadcast %cst_28 : f32 to vector<4x128xf32>
      %c0_29 = arith.constant 0 : index
      %c0_30 = arith.constant 0 : index
      %66 = vector.load %arg9[%c0_29, %c0_30] : memref<4x128xf32, #tpu.memory_space<vmem>>, vector<4x128xf32>
      tpu.vector_store %arg9[%c0_29, %c0_30], %65 {strides = array<i32>} : memref<4x128xf32, #tpu.memory_space<vmem>>, vector<4x128xf32>,
    } else {
    }
    %c0 = arith.constant 0 : index
    %c0_1 = arith.constant 0 : index
    %3 = vector.load %arg2[%c0, %c0_1] : memref<4x128xf32, #tpu.memory_space<vmem>>, vector<4x128xf32>
    %c0_2 = arith.constant 0 : index
    %c0_3 = arith.constant 0 : index
    %4 = vector.load %arg4[%c0_2, %c0_3] : memref<4x128xf32, #tpu.memory_space<vmem>>, vector<4x128xf32>
    %cst = arith.constant 0.000000e+00 : f32
    %5 = vector.broadcast %cst : f32 to vector<4x128xf32>
    %6 = arith.maximumf %4, %5 : vector<4x128xf32>
    %7 = arith.mulf %4, %3 : vector<4x128xf32>
    %8 = arith.subf %6, %7 : vector<4x128xf32>
    %9 = math.absf %4 : vector<4x128xf32>
    %cst_4 = arith.constant 0.000000e+00 : f32
    %10 = vector.broadcast %cst_4 : f32 to vector<4x128xf32>
    %11 = arith.subf %10, %9 : vector<4x128xf32>
    %12 = math.exp %11 : vector<4x128xf32>
    %13 = math.log1p %12 : vector<4x128xf32>
    %14 = arith.addf %8, %13 : vector<4x128xf32>
    %c0_5 = arith.constant 0 : index
    %c0_6 = arith.constant 0 : index
    %15 = vector.load %arg5[%c0_5, %c0_6] : memref<4x128xf32, #tpu.memory_space<vmem>>, vector<4x128xf32>
    %cst_7 = arith.constant 0.000000e+00 : f32
    %16 = vector.broadcast %cst_7 : f32 to vector<4x128xf32>
    %17 = arith.maximumf %15, %16 : vector<4x128xf32>
    %18 = arith.mulf %15, %3 : vector<4x128xf32>
    %19 = arith.subf %17, %18 : vector<4x128xf32>
    %20 = math.absf %15 : vector<4x128xf32>
    %cst_8 = arith.constant 0.000000e+00 : f32
    %21 = vector.broadcast %cst_8 : f32 to vector<4x128xf32>
    %22 = arith.subf %21, %20 : vector<4x128xf32>
    %23 = math.exp %22 : vector<4x128xf32>
    %24 = math.log1p %23 : vector<4x128xf32>
    %25 = arith.addf %19, %24 : vector<4x128xf32>
    %cst_9 = arith.constant 4.000000e-01 : f32
    %26 = vector.broadcast %cst_9 : f32 to vector<4x128xf32>
    %27 = arith.mulf %26, %25 : vector<4x128xf32>
    %28 = arith.addf %14, %27 : vector<4x128xf32>
    %c0_10 = arith.constant 0 : index
    %c0_11 = arith.constant 0 : index
    %29 = vector.load %arg6[%c0_10, %c0_11] : memref<4x128xf32, #tpu.memory_space<vmem>>, vector<4x128xf32>
    %cst_12 = arith.constant 0.000000e+00 : f32
    %30 = vector.broadcast %cst_12 : f32 to vector<4x128xf32>
    %31 = arith.maximumf %29, %30 : vector<4x128xf32>
    %32 = arith.mulf %29, %3 : vector<4x128xf32>
    %33 = arith.subf %31, %32 : vector<4x128xf32>
    %34 = math.absf %29 : vector<4x128xf32>
    %cst_13 = arith.constant 0.000000e+00 : f32
    %35 = vector.broadcast %cst_13 : f32 to vector<4x128xf32>
    %36 = arith.subf %35, %34 : vector<4x128xf32>
    %37 = math.exp %36 : vector<4x128xf32>
    %38 = math.log1p %37 : vector<4x128xf32>
    %39 = arith.addf %33, %38 : vector<4x128xf32>
    %cst_14 = arith.constant 3.000000e-01 : f32
    %40 = vector.broadcast %cst_14 : f32 to vector<4x128xf32>
    %41 = arith.mulf %40, %39 : vector<4x128xf32>
    %42 = arith.addf %28, %41 : vector<4x128xf32>
    %c0_15 = arith.constant 0 : index
    %c0_16 = arith.constant 0 : index
    %43 = vector.load %arg7[%c0_15, %c0_16] : memref<4x128xf32, #tpu.memory_space<vmem>>, vector<4x128xf32>
    %cst_17 = arith.constant 0.000000e+00 : f32
    %44 = vector.broadcast %cst_17 : f32 to vector<4x128xf32>
    %45 = arith.maximumf %43, %44 : vector<4x128xf32>
    %46 = arith.mulf %43, %3 : vector<4x128xf32>
    %47 = arith.subf %45, %46 : vector<4x128xf32>
    %48 = math.absf %43 : vector<4x128xf32>
    %cst_18 = arith.constant 0.000000e+00 : f32
    %49 = vector.broadcast %cst_18 : f32 to vector<4x128xf32>
    %50 = arith.subf %49, %48 : vector<4x128xf32>
    %51 = math.exp %50 : vector<4x128xf32>
    %52 = math.log1p %51 : vector<4x128xf32>
    %53 = arith.addf %47, %52 : vector<4x128xf32>
    %cst_19 = arith.constant 2.000000e-01 : f32
    %54 = vector.broadcast %cst_19 : f32 to vector<4x128xf32>
    %55 = arith.mulf %54, %53 : vector<4x128xf32>
    %56 = arith.addf %42, %55 : vector<4x128xf32>
    %c0_20 = arith.constant 0 : index
    %c0_21 = arith.constant 0 : index
    %57 = vector.load %arg3[%c0_20, %c0_21] : memref<4x128xf32, #tpu.memory_space<vmem>>, vector<4x128xf32>
    %58 = arith.mulf %56, %57 : vector<4x128xf32>
    %c0_22 = arith.constant 0 : index
    %c0_23 = arith.constant 0 : index
    %59 = vector.load %arg9[%c0_22, %c0_23] : memref<4x128xf32, #tpu.memory_space<vmem>>, vector<4x128xf32>
    %60 = arith.addf %59, %58 : vector<4x128xf32>
    %c0_24 = arith.constant 0 : index
    %c0_25 = arith.constant 0 : index
    %61 = vector.load %arg9[%c0_24, %c0_25] : memref<4x128xf32, #tpu.memory_space<vmem>>, vector<4x128xf32>
    tpu.vector_store %arg9[%c0_24, %c0_25], %60 {strides = array<i32>} : memref<4x128xf32, #tpu.memory_space<vmem>>, vector<4x128xf32>,
    %c0_i32_26 = arith.constant 0 : i32
    %62 = arith.cmpi eq, %arg1, %c0_i32_26 : i32
    %63 = arith.extui %62 : i1 to i32
    %c0_i32_27 = arith.constant 0 : i32
    %64 = arith.cmpi ne, %63, %c0_i32_27 : i32
    scf.if %64 {
      %c0_28 = arith.constant 0 : index
      %c0_29 = arith.constant 0 : index
      %65 = vector.load %arg9[%c0_28, %c0_29] : memref<4x128xf32, #tpu.memory_space<vmem>>, vector<4x128xf32>
      %66 = vector.shape_cast %65 : vector<4x128xf32> to vector<1x4x128xf32>
      %cst_30 = arith.constant dense<0.000000e+00> : vector<1xf32>
      %67 = vector.multi_reduction <add>, %66, %cst_30 [1, 2] : vector<1x4x128xf32> to vector<1xf32>
      %68 = vector.shape_cast %67 : vector<1xf32> to vector<1x1x1xf32>
      %69 = vector.extract %68[0, 0, 0] : f32 from vector<1x1x1xf32>
      %cst_31 = arith.constant 0.001953125 : f32
      %70 = arith.mulf %69, %cst_31 : f32
      %c0_32 = arith.constant 0 : index
      %c0_33 = arith.constant 0 : index
      %71 = memref.load %arg8[%c0_32, %c0_33] : memref<1x1xf32, #tpu.memory_space<smem>>
      memref.store %70, %arg8[%c0_32, %c0_33] : memref<1x1xf32, #tpu.memory_space<smem>>
    } else {
    }
    return
  }
  func.func @transform_0(%arg0: i32, %arg1: i32) -> (i32, i32) {
    %c1_i32 = arith.constant 1 : i32
    %0 = arith.muli %arg0, %c1_i32 : i32
    %1 = arith.addi %0, %arg1 : i32
    %c0_i32 = arith.constant 0 : i32
    %c0_i32_0 = arith.constant 0 : i32
    return %1, %c0_i32 : i32, i32
  }
  func.func @transform_1(%arg0: i32, %arg1: i32) -> (i32, i32) {
    %c1_i32 = arith.constant 1 : i32
    %0 = arith.muli %arg0, %c1_i32 : i32
    %1 = arith.addi %0, %arg1 : i32
    %c0_i32 = arith.constant 0 : i32
    %c0_i32_0 = arith.constant 0 : i32
    return %1, %c0_i32 : i32, i32
  }
  func.func @transform_2(%arg0: i32, %arg1: i32) -> (i32, i32) {
    %c1_i32 = arith.constant 1 : i32
    %0 = arith.muli %arg0, %c1_i32 : i32
    %1 = arith.addi %0, %arg1 : i32
    %c0_i32 = arith.constant 0 : i32
    %c0_i32_0 = arith.constant 0 : i32
    return %1, %c0_i32 : i32, i32
  }
  func.func @transform_3(%arg0: i32, %arg1: i32) -> (i32, i32) {
    %c1_i32 = arith.constant 1 : i32
    %0 = arith.muli %arg0, %c1_i32 : i32
    %1 = arith.addi %0, %arg1 : i32
    %c0_i32 = arith.constant 0 : i32
    %c0_i32_0 = arith.constant 0 : i32
    return %1, %c0_i32 : i32, i32
  }
  func.func @transform_4(%arg0: i32, %arg1: i32) -> (i32, i32) {
    %c1_i32 = arith.constant 1 : i32
    %0 = arith.muli %arg0, %c1_i32 : i32
    %1 = arith.addi %0, %arg1 : i32
    %c0_i32 = arith.constant 0 : i32
    %c0_i32_0 = arith.constant 0 : i32
    return %1, %c0_i32 : i32, i32
  }
  func.func @transform_5(%arg0: i32, %arg1: i32) -> (i32, i32) {
    %c1_i32 = arith.constant 1 : i32
    %0 = arith.muli %arg0, %c1_i32 : i32
    %1 = arith.addi %0, %arg1 : i32
    %c0_i32 = arith.constant 0 : i32
    %c0_i32_0 = arith.constant 0 : i32
    return %1, %c0_i32 : i32, i32
  }
  func.func @transform_6(%arg0: i32, %arg1: i32) -> (i32, i32) {
    %c0_i32 = arith.constant 0 : i32
    %c0_i32_0 = arith.constant 0 : i32
    return %arg0, %c0_i32 : i32, i32
  }
}

</mosaic_0001>

<bundles_post_ra>
// kernel: tpu_custom_call.1
= control target key start
LH: loop header
LB: loop body
LE: loop exit
PB: predicated region body
PF: predicated region fallthrough
CT: control target
= control target key end

     0   :  { %11 = vsyncpa [#allocation4], 0  ;;  %s455_s0 = inlined_call_operand.hbm [shape: f32[4,128], index: 0, kind: input, shape index: {}]   ;;  %s456_s1 = inlined_call_operand.hbm [shape: f32[4,128], index: 1, kind: input, shape index: {}]   ;;  %s457_s2 = inlined_call_operand.vmem [shape: f32[4,128], index: 2, kind: input, shape index: {}]   ;;  %s458_s3 = inlined_call_operand.vmem [shape: f32[4,128], index: 3, kind: input, shape index: {}]   ;;  %s459_s4 = inlined_call_operand.vmem [shape: f32[4,128], index: 4, kind: input, shape index: {}]   ;;  %s460_s5 = inlined_call_operand.vmem [shape: f32[4,128], index: 5, kind: input, shape index: {}]   ;;  %s461_s6 = inlined_call_operand.hbm [shape: f32[1,1], index: 6, kind: output, shape index: {}]  }
   0x1   :  { %12 = vsyncpa [#allocation7], 0 }
   0x2   :  { %13 = vsyncpa [#allocation5], 0  ;;  %s352_s21 = smov [#allocation3]   ;;  %s353_s23 = smov [#allocation6]  }
   0x3   :  { %s23_s22 = sshll.u32 %s352_s21, 4  ;;  %s36_s24 = sshll.u32 %s353_s23, 4  ;;  %s24_s22 = int_to_ptr.vmem [resolvable:$true] %s23_s22  ;;  %s37_s24 = int_to_ptr.vmem [resolvable:$true] %s36_s24 }
   0x4   :  { %s292_s27 = scalar_lea.hbm %s455_s0, 64 }
   0x5   :  { %p293_p0 = scmp.ne.s32.totalorder %s455_s0, %s292_s27  ;;  %p296_p1 = scmp.lt.u32.totalorder %s292_s27, %s455_s0 }
   0x7   :  { %p298_p2 = pnand %p296_p1, %p293_p0 }
   0x9   :  { %301 = shalt.err (!%p298_p2)
}
   0xa   :  { %s302_s8 = scalar_lea.vmem %s24_s22, 64  ;;  %p307_p4 = scmp.lt.s32.totalorder %s24_s22, %s24_s22 }
   0xb   :  { %p303_p3 = scmp.ne.s32.totalorder %s24_s22, %s302_s8  ;;  %p308_p5 = scmp.lt.s32.totalorder %s302_s8, %s302_s8 }
   0xd   :  { %p309_p6 = por %p308_p5, %p307_p4 }
   0xf   :  { %p310_p7 = pnand %p309_p6, %p303_p3 }
  0x11   :  { %313 = shalt.err (!%p310_p7)
}
  0x12   :  { %26 = dma.hbm_to_vmem [thread:$0]  %s455_s0, 64, %s24_s22, [#allocation4]  }
  0x13   :  { %s314_s13 = scalar_lea.hbm %s456_s1, 64 }
  0x14   :  { %p315_p8 = scmp.ne.s32.totalorder %s456_s1, %s314_s13  ;;  %p318_p9 = scmp.lt.u32.totalorder %s314_s13, %s456_s1 }
  0x16   :  { %p320_p10 = pnand %p318_p9, %p315_p8 }
  0x18   :  { %323 = shalt.err (!%p320_p10)
}
  0x19   :  { %s324_s18 = scalar_lea.vmem %s37_s24, 64  ;;  %p329_p12 = scmp.lt.s32.totalorder %s37_s24, %s37_s24 }
  0x1a   :  { %p325_p11 = scmp.ne.s32.totalorder %s37_s24, %s324_s18  ;;  %p330_p13 = scmp.lt.s32.totalorder %s324_s18, %s324_s18 }
  0x1c   :  { %p331_p0 = por %p330_p13, %p329_p12 }
  0x1e   :  { %p332_p1 = pnand %p331_p0, %p325_p11 }
  0x20   :  { %335 = shalt.err (!%p332_p1)
}
  0x21   :  { %39 = dma.hbm_to_vmem [thread:$0]  %s456_s1, 64, %s37_s24, [#allocation7]  }
  0x22   :  { %346 = dma.done.wait [#allocation4], 64  }
  0x23   :  { %347 = vsyncadd [#allocation4], 4294967232 }
  0x24   :  { %348 = dma.done.wait [#allocation7], 64  }
  0x25   :  { %349 = vsyncadd [#allocation7], 4294967232  ;;  %v354_v0 = vmov 0.0   ;;  %v130_v1 = vld [vmem:[%s457_s2] sm:$0xf]  ;;  %vm217_vm4 = vcmask 1043456  }
  0x26   :  { %128 = vst [vmem:[#allocation2] sm:$0xf] %v354_v0  ;;  %v148_v2 = vld [vmem:[%s458_s3] sm:$0xf]  ;;  %v134_v3 = vand.u32 2147483647, %v130_v1 }
  0x27   :  { %v424_v4 = vld [vmem:[%s459_s4] sm:$0xf]  ;;  %v152_v5 = vand.u32 2147483647, %v148_v2  ;;  %v129_v28 = vld [vmem:[#allocation3] sm:$0xf] }
  0x28   :  { %v429_v6 = vld [vmem:[%s460_s5] sm:$0xf]  ;;  %v135_v7 = vsub.f32 0.0, %v134_v3  ;;  %v172_v8 = vand.u32 2147483647, %v424_v4  ;;  %v131_v29 = vmax.f32 %v130_v1, 0.0  ;;  %v132_v30 = vmul.f32 %v130_v1, %v129_v28 }
  0x29   :  { %v153_v9 = vsub.f32 0.0, %v152_v5  ;;  %v192_v12 = vand.u32 2147483647, %v429_v6  ;;  %v149_v35 = vmax.f32 %v148_v2, 0.0  ;;  %v150_v36 = vmul.f32 %v148_v2, %v129_v28  ;;  %s336_s27 = scalar_lea.hbm %s461_s6, 16 }
  0x2a   :  { %v136_v10 = vmul.f32 1.442695, %v135_v7  ;;  %v173_v11 = vsub.f32 0.0, %v172_v8  ;;  %v169_v39 = vmax.f32 %v424_v4, 0.0  ;;  %v170_v40 = vmul.f32 %v424_v4, %v129_v28  ;;  %p337_p2 = scmp.ne.s32.totalorder %s461_s6, %s336_s27  ;;  %p340_p3 = scmp.lt.u32.totalorder %s336_s27, %s461_s6 }
  0x2b   :  { %v154_v13 = vmul.f32 1.442695, %v153_v9  ;;  %v193_v15 = vsub.f32 0.0, %v192_v12  ;;  %v133_v42 = vsub.f32 %v131_v29, %v132_v30  ;;  %v189_v44 = vmax.f32 %v429_v6, 0.0  ;;  %v208_v12 = vld [vmem:[#allocation6] sm:$0xf] }
  0x2c   :  { %276 = vpow2.f32 %v136_v10  ;;  %v174_v14 = vmul.f32 1.442695, %v173_v11  ;;  %v190_v49 = vmul.f32 %v429_v6, %v129_v28  ;;  %v151_v53 = vsub.f32 %v149_v35, %v150_v36  ;;  %p342_p4 = pnand %p340_p3, %p337_p2 }
  0x2d   :  { %278 = vpow2.f32 %v154_v13  ;;  %v194_v16 = vmul.f32 1.442695, %v193_v15  ;;  %v171_v57 = vsub.f32 %v169_v39, %v170_v40 }
  0x2e   :  { %280 = vpow2.f32 %v174_v14  ;;  %v191_v63 = vsub.f32 %v189_v44, %v190_v49  ;;  %v210_v14 = vld [vmem:[#allocation2] sm:$0xf] }
  0x2f   :  { %282 = vpow2.f32 %v194_v16 }
  0x36   :  { %v277_v17 = vpop.eup %276 }
  0x37   :  { %v279_v18 = vpop.eup %278  ;;  %v138_v19 = vadd.f32 1.0, %v277_v17  ;;  %v141_v24 = vmul.f32 -0.5, %v277_v17  ;;  %v144_v33 = vand.u32 2147483647, %v277_v17 }
  0x38   :  { %v281_v20 = vpop.eup %280  ;;  %v156_v21 = vadd.f32 1.0, %v279_v18  ;;  %v159_v25 = vmul.f32 -0.5, %v279_v18  ;;  %v162_v37 = vand.u32 2147483647, %v279_v18 }
  0x39   :  { %284 = vlog2.f32 %v138_v19  ;;  %v176_v22 = vadd.f32 1.0, %v281_v20  ;;  %v283_v23 = vpop.eup %282  ;;  %v179_v27 = vmul.f32 -0.5, %v281_v20  ;;  %v142_v31 = vadd.f32 1.0, %v141_v24 }
  0x3a   :  { %286 = vlog2.f32 %v156_v21  ;;  %v196_v26 = vadd.f32 1.0, %v283_v23  ;;  %v199_v32 = vmul.f32 -0.5, %v283_v23  ;;  %v160_v34 = vadd.f32 1.0, %v159_v25 }
  0x3b   :  { %288 = vlog2.f32 %v176_v22  ;;  %v180_v38 = vadd.f32 1.0, %v179_v27  ;;  %v182_v41 = vand.u32 2147483647, %v281_v20  ;;  %v143_v43 = vmul.f32 %v277_v17, %v142_v31 }
  0x3c   :  { %290 = vlog2.f32 %v196_v26  ;;  %v200_v45 = vadd.f32 1.0, %v199_v32  ;;  %vm436_vm0 = vcmp.lt.f32.partialorder %v144_v33, 0.0004427343  ;;  %v161_v48 = vmul.f32 %v279_v18, %v160_v34 }
  0x3d   :  { %v202_v50 = vand.u32 2147483647, %v283_v23  ;;  %vm163_vm1 = vcmp.lt.f32.partialorder %v162_v37, 0.0004427343  ;;  %v181_v54 = vmul.f32 %v281_v20, %v180_v38  ;;  %vm183_vm2 = vcmp.lt.f32.partialorder %v182_v41, 0.0004427343 }
  0x3e   :  { %v201_v60 = vmul.f32 %v283_v23, %v200_v45 }
  0x3f   :  { %vm203_vm3 = vcmp.lt.f32.partialorder %v202_v50, 0.0004427343 }
  0x43   :  { %v285_v46 = vpop.eup %284 }
  0x44   :  { %v287_v51 = vpop.eup %286  ;;  %v140_v52 = vmul.f32 0.6931472, %v285_v46 }
  0x45   :  { %v289_v55 = vpop.eup %288  ;;  %v158_v56 = vmul.f32 0.6931472, %v287_v51 }
  0x46   :  { %v146_v58 = vsel %vm436_vm0, %v143_v43, %v140_v52  ;;  %v178_v59 = vmul.f32 0.6931472, %v289_v55  ;;  %v291_v61 = vpop.eup %290 }
  0x47   :  { %v164_v62 = vsel %vm163_vm1, %v161_v48, %v158_v56  ;;  %v147_v0 = vadd.f32 %v146_v58, %v133_v42  ;;  %v198_v3 = vmul.f32 0.6931472, %v291_v61 }
  0x48   :  { %v165_v1 = vadd.f32 %v164_v62, %v151_v53  ;;  %v184_v2 = vsel %vm183_vm2, %v181_v54, %v178_v59 }
  0x49   :  { %v185_v4 = vadd.f32 %v184_v2, %v171_v57  ;;  %v204_v6 = vsel %vm203_vm3, %v201_v60, %v198_v3 }
  0x4a   :  { %v166_v5 = vmul.f32 0.4, %v165_v1  ;;  %v205_v8 = vadd.f32 %v204_v6, %v191_v63 }
  0x4b   :  { %v186_v7 = vmul.f32 0.3, %v185_v4 }
  0x4c   :  { %v167_v9 = vadd.f32 %v166_v5, %v147_v0  ;;  %v206_v10 = vmul.f32 0.2, %v205_v8 }
  0x4e   :  { %v187_v11 = vadd.f32 %v186_v7, %v167_v9 }
  0x50   :  { %v207_v13 = vadd.f32 %v206_v10, %v187_v11 }
  0x52   :  { %v209_v15 = vmul.f32 %v208_v12, %v207_v13 }
  0x54   :  { %v211_v16 = vadd.f32 %v210_v14, %v209_v15 }
  0x56   :  { %212 = vst [vmem:[#allocation2] sm:$0xf] %v211_v16 }
  0x5d   :  { %v216_v17 = vld [vmem:[#allocation2] sm:$0xf] }
  0x5e   :  { %v218_v18 = vsel %vm217_vm4, %v216_v17, 0.0 }
  0x5f   :  { %219 = vadd.xlane.f32.xlu0 %v218_v18 }
  0xec   :  { %v220_v19 = vpop.xlane.xlu0 %219 }
  0xed   :  { %v221_v20 = vrot.slane %v220_v19, 4 }
  0xef   :  { %v222_v21 = vadd.f32 %v221_v20, %v220_v19 }
  0xf1   :  { %v223_v22 = vrot.slane %v222_v21, 2 }
  0xf3   :  { %v224_v23 = vadd.f32 %v223_v22, %v222_v21 }
  0xf5   :  { %v225_v24 = vrot.slane %v224_v23, 1 }
  0xf7   :  { %v226_v25 = vadd.f32 %v225_v24, %v224_v23 }
  0xf9   :  { %270 = vpush %v226_v25 }
 0x12a   :  { %s271_s2 = spop %270 }
 0x12b   :  { %s228_s3 = smul.f32 0.001953125, %s271_s2 }
 0x12d   :  { %230 = sst [smem:[#allocation8]] %s228_s3 }
 0x12e   :  { %345 = shalt.err (!%p342_p4)
}
 0x12f   :  { %s355_s8 = smov [#allocation8]  }
 0x130   :  { %238 = dma.smem_to_hbm %s355_s8, 16, %s461_s6, [#allocation5]  }
 0x131   :  { %350 = dma.done.wait [#allocation5], 16  }
 0x132   :  { %351 = vsyncadd [#allocation5], 4294967280 }
 0x133   :  { %242 = sfence }
 0x134   :  { %243 = vsyncpa [#allocation4], 1 }
 0x135   :  { %244 = vsyncpa [#allocation7], 1 }
 0x136   :  { %245 = vsyncpa [#allocation5], 1 }

</bundles_post_ra>
